<compile_context>
chip_gen: v5e
topology: v5e:2x2
jax: 0.10.0
libtpu: 0.0.40
codegen_flags: <defaults>
</compile_context>

<pallas_src>
import functools

import jax
import jax.numpy as jnp
from jax import lax
from jax.experimental import pallas as pl
from jax.experimental.pallas import tpu as pltpu


def _round_up(x, m):
    return ((x + m - 1) // m) * m


def _vmem_capacity_bytes():
    """Physical VMEM per core (128 MiB on v5e/v6e, 64 MiB on v7x)."""
    try:
        cap = int(pltpu.get_tpu_info().vmem_capacity_bytes)
        if cap > 0:
            return cap
    except Exception:
        pass
    return 64 * 1024 * 1024   # conservative fallback (v7x-sized)


def _footprint_bytes(tb, sp, ep, hp, tc, mask_lanes):
    """Rough per-grid-step VMEM footprint (double-buffered IO + temporaries)."""
    b = 0
    b += 2 * tb * sp * ep * 2              # hidden tile (bf16), double buffered
    b += tb * sp * hp * 2                  # o1 scratch (bf16, single buffered)
    b += 2 * (ep * hp + hp * tc) * 2       # W1 / W2 (bf16), double buffered
    b += 2 * (hp + tc) * 4                 # biases (f32), double buffered
    if mask_lanes:
        b += 2 * tb * sp * mask_lanes * 4  # mask tile (f32), double buffered
    b += 5 * tb * sp * tc * 4              # o2 / where / exp / attn / iota (f32)
    b += 2 * tb * tc * ep * 4              # weighted output tile, dbl buffered
    b += 2 * tb * tc * sp * 4              # attention output tile, dbl buffered
    return b


def _pick_tiles(batch, sp, ep, hp, cp, mask_lanes, vmem_budget):
    """Pick (TB, TC) tiles that fit the VMEM budget."""
    tc = min(cp, 512)
    # Keep >= 2 batch blocks when possible so the "parallel" batch axis can be
    # sharded across v7x's two TensorCores.
    tb_cap = max(1, -(-batch // 2)) if batch >= 2 else 1
    tb = max(1, min(batch, -(-256 // sp), 16, tb_cap))
    while tb > 1 and _footprint_bytes(tb, sp, ep, hp, tc, mask_lanes) > vmem_budget:
        tb = max(1, tb // 2)
    while tc > 128 and _footprint_bytes(tb, sp, ep, hp, tc, mask_lanes) > vmem_budget:
        tc = max(128, _round_up(tc // 2, 128))
    return tb, tc


def _label_attn_kernel(valid_s, has_mask, *refs):
    if has_mask:
        (hidden_ref, mask_ref, w1_ref, b1_ref, w2_ref, b2_ref,
         weighted_ref, attn_ref, o1_ref) = refs
    else:
        (hidden_ref, w1_ref, b1_ref, w2_ref, b2_ref,
         weighted_ref, attn_ref, o1_ref) = refs
        mask_ref = None

    tb, sp, ep = hidden_ref.shape
    tc = w2_ref.shape[1]

    # ---- Linear1 + tanh (class-tile invariant): compute once per batch block,
    # cache in VMEM scratch (bf16) and reuse for the remaining class tiles. ----
    @pl.when(pl.program_id(1) == 0)
    def _():
        h2 = hidden_ref[...].reshape(tb * sp, ep)                    # bf16
        o1 = jnp.tanh(
            jnp.dot(h2, w1_ref[...], preferred_element_type=jnp.float32)
            + b1_ref[...])                                           # f32
        o1_ref[...] = o1.astype(o1_ref.dtype)

    # ---- Linear2 over all TB*Sp rows at once (bf16 MXU, f32 accumulate) ----
    o2 = (jnp.dot(o1_ref[...], w2_ref[...],
                  preferred_element_type=jnp.float32)
          + b2_ref[...])                                             # (TB*Sp, TC)

    # Optional user attention mask (broadcast over classes if last dim == 1).
    if mask_ref is not None:
        mask2 = mask_ref[...].reshape(tb * sp, mask_ref.shape[-1])
        o2 = jnp.where(mask2 == 0.0, jnp.float32(-1e9), o2)

    o2 = o2.reshape(tb, sp, tc)                                      # (TB,Sp,TC)

    # Padded sequence rows (S rounded up to 128) must not contribute.
    if sp != valid_s:
        s_idx = lax.broadcasted_iota(jnp.int32, (tb, sp, tc), 1)
        o2 = jnp.where(s_idx < valid_s, o2, -jnp.inf)

    # ---- Batched softmax over the sequence axis (no per-batch unroll) ----
    m = jnp.max(o2, axis=1, keepdims=True)                           # (TB,1,TC)
    e = jnp.exp(o2 - m)                                              # (TB,Sp,TC)
    denom = jnp.sum(e, axis=1, keepdims=True)                        # (TB,1,TC)
    # EUP reciprocal + VPU multiply instead of a wide divide.
    attn = e * pl.reciprocal(denom, approx=True)                     # (TB,Sp,TC)

    # weighted[b, c, e] = sum_s attn[b, s, c] * hidden[b, s, e]
    # One batched MXU call; contraction over seq avoids an explicit transpose.
    hid = hidden_ref[...]                                            # bf16
    weighted_ref[...] = lax.dot_general(
        attn.astype(hid.dtype), hid,
        dimension_numbers=(((1,), (1,)), ((0,), (0,))),
        preferred_element_type=jnp.float32,
    ).astype(weighted_ref.dtype)                                     # (TB,TC,Ep)

    # Store attention already transposed to the module's (B, C, S) layout.
    # Sp is a multiple of 128 -> lane-dense, unmasked stores. Only the small
    # 2-D XLU transpose + store is unrolled over the (small) batch tile.
    for b in range(tb):
        attn_ref[b] = attn[b].T.astype(attn_ref.dtype)               # (TC, Sp)


def label_attention_layer(hidden, w1, b1, w2, b2, attn_mask=None,
                          compute_dtype=jnp.bfloat16):
    """Pallas implementation of LabelAttentionLayer.forward.

    hidden: (B, S, E); w1: (E, H), b1: (H,), w2: (H, C), b2: (C,)
    attn_mask: optional; (B, S), (B, S, 1) or (B, S, C); positions == 0 are
               filled with -1e9 before the sequence softmax.
    Returns (weighted_output (B, C, E), attn_weights (B, C, S) float32).
    """
    B, S, E = hidden.shape
    H = w1.shape[1]
    C = w2.shape[1]
    out_dtype = hidden.dtype

    # Pad to TPU-friendly tiles. S is padded to 128 so the transposed (B,C,S)
    # attention writeback is lane-dense.
    Sp = _round_up(S, 128)
    Ep = _round_up(E, 128)
    Hp = _round_up(H, 128)
    Cp = _round_up(C, 128)

    vmem_cap = _vmem_capacity_bytes()
    vmem_budget = (vmem_cap * 5) // 8     # headroom for Mosaic-internal scratch
    vmem_limit = (vmem_cap * 3) // 4

    has_mask = attn_mask is not None
    m = None
    mask_lanes_est = 0
    if has_mask:
        m = attn_mask
        if m.ndim == 2:                    # (B, S) key-padding mask
            m = m[:, :, None]
        if m.shape[-1] not in (1, C):
            raise ValueError("attn_mask trailing dim must be 1 or num_classes")
        m = m.astype(jnp.float32)
        mask_lanes_est = 1 if m.shape[-1] == 1 else min(Cp, 512)

    TB, TC = _pick_tiles(B, Sp, Ep, Hp, Cp, mask_lanes_est, vmem_budget)
    Cp = _round_up(Cp, TC)
    Bp = _round_up(B, TB)

    hidden_p = jnp.pad(hidden.astype(compute_dtype),
                       ((0, Bp - B), (0, Sp - S), (0, Ep - E)))
    w1_p = jnp.pad(w1.astype(compute_dtype), ((0, Ep - E), (0, Hp - H)))
    b1_p = jnp.pad(b1.astype(jnp.float32), ((0, Hp - H),)).reshape(1, Hp)
    w2_p = jnp.pad(w2.astype(compute_dtype), ((0, Hp - H), (0, Cp - C)))
    b2_p = jnp.pad(b2.astype(jnp.float32), ((0, Cp - C),)).reshape(1, Cp)

    in_specs = [pl.BlockSpec((TB, Sp, Ep), lambda bi, ci: (bi, 0, 0))]
    inputs = [hidden_p]

    if has_mask:
        if m.shape[-1] == 1:
            # Cheap path: DMA only (B, S, 1); broadcast over classes in-kernel.
            m_p = jnp.pad(m, ((0, Bp - B), (0, Sp - S), (0, 0)),
                          constant_values=1.0)
            in_specs.append(pl.BlockSpec((TB, Sp, 1), lambda bi, ci: (bi, 0, 0)))
        else:
            m_p = jnp.pad(m, ((0, Bp - B), (0, Sp - S), (0, Cp - C)),
                          constant_values=1.0)
            in_specs.append(pl.BlockSpec((TB, Sp, TC), lambda bi, ci: (bi, 0, ci)))
        inputs.append(m_p)

    in_specs += [
        pl.BlockSpec((Ep, Hp), lambda bi, ci: (0, 0)),
        pl.BlockSpec((1, Hp), lambda bi, ci: (0, 0)),
        pl.BlockSpec((Hp, TC), lambda bi, ci: (0, ci)),
        pl.BlockSpec((1, TC), lambda bi, ci: (0, ci)),
    ]
    inputs += [w1_p, b1_p, w2_p, b2_p]

    out_shape = (
        jax.ShapeDtypeStruct((Bp, Cp, Ep), out_dtype),     # weighted (padded)
        jax.ShapeDtypeStruct((Bp, Cp, Sp), jnp.float32),   # attn, (B,C,S) layout
    )
    out_specs = (
        pl.BlockSpec((TB, TC, Ep), lambda bi, ci: (bi, ci, 0)),
        pl.BlockSpec((TB, TC, Sp), lambda bi, ci: (bi, ci, 0)),
    )

    grid = (Bp // TB, Cp // TC)
    weighted_p, attn_p = pl.pallas_call(
        functools.partial(_label_attn_kernel, S, has_mask),
        out_shape=out_shape,
        grid_spec=pltpu.PrefetchScalarGridSpec(
            num_scalar_prefetch=0,
            grid=grid,
            in_specs=in_specs,
            out_specs=out_specs,
            scratch_shapes=[pltpu.VMEM((TB * Sp, Hp), compute_dtype)],
        ),
        compiler_params=pltpu.CompilerParams(
            # Class axis must be "arbitrary" so the o1 cache (written at ci==0,
            # read for ci>0) is legal; batch axis stays parallel for megacore.
            dimension_semantics=("parallel", "arbitrary"),
            vmem_limit_bytes=int(vmem_limit),
        ),
    )(*inputs)

    weighted = weighted_p[:B, :C, :E]
    attn_w = attn_p[:B, :C, :S]          # already (B, C, S): no XLA transpose
    return weighted, attn_w


def _reference(hidden, w1, b1, w2, b2, attn_mask=None):
    """Pure-JAX reference mirroring the PyTorch forward."""
    o1 = jnp.tanh(hidden @ w1 + b1)          # (B, S, H)
    o2 = o1 @ w2 + b2                        # (B, S, C)
    if attn_mask is not None:
        m = attn_mask if attn_mask.ndim == 3 else attn_mask[:, :, None]
        o2 = jnp.where(m == 0, -1e9, o2)
    attn = jax.nn.softmax(o2, axis=1)        # softmax over seq (dim=1)
    attn_w = jnp.swapaxes(attn, 1, 2)        # (B, C, S)
    weighted = attn_w @ hidden               # (B, C, E)
    return weighted, attn_w


if __name__ == "__main__":
    # Small shapes consistent with the module: embed_size=32, attn_expansion=2,
    # num_classes=16, batch=2, seq=10 (exercises sequence padding).
    B, S, E = 2, 10, 32
    expansion = 2
    H = E * expansion
    C = 16

    key = jax.random.PRNGKey(0)
    k_h, k_w1, k_b1, k_w2, k_b2, k_m = jax.random.split(key, 6)

    hidden = jax.random.normal(k_h, (B, S, E), dtype=jnp.float32)

    # Deterministic parameter init (uniform, Linear-style scaling).
    bound1 = 1.0 / (E ** 0.5)
    w1 = jax.random.uniform(k_w1, (E, H), jnp.float32, -bound1, bound1)
    b1 = jax.random.uniform(k_b1, (H,), jnp.float32, -bound1, bound1)
    bound2 = 1.0 / (H ** 0.5)
    w2 = jax.random.uniform(k_w2, (H, C), jnp.float32, -bound2, bound2)
    b2 = jax.random.uniform(k_b2, (C,), jnp.float32, -bound2, bound2)

    # Tolerances account for bf16 MXU operands + the EUP approximate reciprocal.
    ATOL = RTOL = 3e-2

    # --- no mask ---
    weighted, attn_w = label_attention_layer(hidden, w1, b1, w2, b2)
    jax.block_until_ready((weighted, attn_w))
    ref_w, ref_a = _reference(hidden, w1, b1, w2, b2)
    assert weighted.shape == (B, C, E) and attn_w.shape == (B, C, S)
    assert jnp.allclose(weighted, ref_w, atol=ATOL, rtol=RTOL)
    assert jnp.allclose(attn_w, ref_a, atol=ATOL, rtol=RTOL)

    # --- with a (B, S) key-padding mask (broadcast over classes) ---
    mask = (jax.random.uniform(k_m, (B, S)) > 0.3).astype(jnp.int32)
    mask = mask.at[:, 0].set(1)   # keep at least one valid position per row
    weighted_m, attn_m = label_attention_layer(hidden, w1, b1, w2, b2,
                                               attn_mask=mask)
    jax.block_until_ready((weighted_m, attn_m))
    ref_wm, ref_am = _reference(hidden, w1, b1, w2, b2, attn_mask=mask)
    assert weighted_m.shape == (B, C, E) and attn_m.shape == (B, C, S)
    assert jnp.allclose(weighted_m, ref_wm, atol=ATOL, rtol=RTOL)
    assert jnp.allclose(attn_m, ref_am, atol=ATOL, rtol=RTOL)

    print("KERNEL_OK")
</pallas_src>

<mosaic_0001>
module attributes {stable_mosaic.version = 11 : i64} {
  func.func @_label_attn_kernel(%arg0: i32, %arg1: i32, %arg2: memref<1x128x128xbf16, #tpu.memory_space<vmem>>, %arg3: memref<128x128xbf16, #tpu.memory_space<vmem>>, %arg4: memref<1x128xf32, #tpu.memory_space<vmem>>, %arg5: memref<128x128xbf16, #tpu.memory_space<vmem>>, %arg6: memref<1x128xf32, #tpu.memory_space<vmem>>, %arg7: memref<1x128x128xf32, #tpu.memory_space<vmem>>, %arg8: memref<1x128x128xf32, #tpu.memory_space<vmem>>, %arg9: memref<128x128xbf16, #tpu.memory_space<vmem>>) attributes {dimension_semantics = [#tpu.dimension_semantics<parallel>, #tpu.dimension_semantics<arbitrary>], iteration_bounds = array<i64: 2, 1>, scalar_prefetch = 0 : i64, scratch_operands = 1 : i64, tpu.core_type = #tpu.core_type<tc>, window_params = [{transform_indices = @transform_0, window_bounds = array<i64: 1, 128, 128>}, {pipeline_mode = #tpu.pipeline_mode<synchronous>, transform_indices = @transform_1, window_bounds = array<i64: 128, 128>}, {pipeline_mode = #tpu.pipeline_mode<synchronous>, transform_indices = @transform_2, window_bounds = array<i64: 1, 128>}, {transform_indices = @transform_3, window_bounds = array<i64: 128, 128>}, {transform_indices = @transform_4, window_bounds = array<i64: 1, 128>}, {transform_indices = @transform_5, window_bounds = array<i64: 1, 128, 128>}, {transform_indices = @transform_6, window_bounds = array<i64: 1, 128, 128>}]} {
    %c0_i32 = arith.constant 0 : i32
    %0 = arith.cmpi eq, %arg1, %c0_i32 : i32
    %1 = arith.extui %0 : i1 to i32
    %c0_i32_0 = arith.constant 0 : i32
    %2 = arith.cmpi ne, %1, %c0_i32_0 : i32
    scf.if %2 {
      %c0_19 = arith.constant 0 : index
      %c0_20 = arith.constant 0 : index
      %c0_21 = arith.constant 0 : index
      %34 = vector.load %arg2[%c0_19, %c0_20, %c0_21] : memref<1x128x128xbf16, #tpu.memory_space<vmem>>, vector<1x128x128xbf16>
      %35 = vector.shape_cast %34 : vector<1x128x128xbf16> to vector<128x128xbf16>
      %c0_22 = arith.constant 0 : index
      %c0_23 = arith.constant 0 : index
      %36 = vector.load %arg3[%c0_22, %c0_23] : memref<128x128xbf16, #tpu.memory_space<vmem>>, vector<128x128xbf16>
      %cst_24 = arith.constant dense<0.000000e+00> : vector<128x128xf32>
      %37 = tpu.matmul %35, %36, %cst_24 {dimension_numbers = #tpu.dot_dimension_numbers<[1], [0], [0], [1], [0, 0, 1, 1], [], []>} : vector<128x128xbf16>, vector<128x128xbf16>, vector<128x128xf32> -> vector<128x128xf32>
      %c0_25 = arith.constant 0 : index
      %c0_26 = arith.constant 0 : index
      %38 = vector.load %arg4[%c0_25, %c0_26] : memref<1x128xf32, #tpu.memory_space<vmem>>, vector<1x128xf32>
      %39 = vector.broadcast %38 : vector<1x128xf32> to vector<128x128xf32>
      %40 = arith.addf %37, %39 : vector<128x128xf32>
      %41 = math.tanh %40 : vector<128x128xf32>
      %42 = arith.truncf %41 : vector<128x128xf32> to vector<128x128xbf16>
      %c0_27 = arith.constant 0 : index
      %c0_28 = arith.constant 0 : index
      %43 = vector.load %arg9[%c0_27, %c0_28] : memref<128x128xbf16, #tpu.memory_space<vmem>>, vector<128x128xbf16>
      tpu.vector_store %arg9[%c0_27, %c0_28], %42 {strides = array<i32>} : memref<128x128xbf16, #tpu.memory_space<vmem>>, vector<128x128xbf16>,
    } else {
    }
    %c0 = arith.constant 0 : index
    %c0_1 = arith.constant 0 : index
    %3 = vector.load %arg9[%c0, %c0_1] : memref<128x128xbf16, #tpu.memory_space<vmem>>, vector<128x128xbf16>
    %c0_2 = arith.constant 0 : index
    %c0_3 = arith.constant 0 : index
    %4 = vector.load %arg5[%c0_2, %c0_3] : memref<128x128xbf16, #tpu.memory_space<vmem>>, vector<128x128xbf16>
    %cst = arith.constant dense<0.000000e+00> : vector<128x128xf32>
    %5 = tpu.matmul %3, %4, %cst {dimension_numbers = #tpu.dot_dimension_numbers<[1], [0], [0], [1], [0, 0, 1, 1], [], []>} : vector<128x128xbf16>, vector<128x128xbf16>, vector<128x128xf32> -> vector<128x128xf32>
    %c0_4 = arith.constant 0 : index
    %c0_5 = arith.constant 0 : index
    %6 = vector.load %arg6[%c0_4, %c0_5] : memref<1x128xf32, #tpu.memory_space<vmem>>, vector<1x128xf32>
    %7 = vector.broadcast %6 : vector<1x128xf32> to vector<128x128xf32>
    %8 = arith.addf %5, %7 : vector<128x128xf32>
    %9 = vector.shape_cast %8 : vector<128x128xf32> to vector<1x128x128xf32>
    %10 = tpu.iota {dimensions = array<i32: 1>} : vector<1x128x128xi32>
    %c10_i32 = arith.constant 10 : i32
    %11 = vector.broadcast %c10_i32 : i32 to vector<1x128x128xi32>
    %12 = arith.cmpi slt, %10, %11 : vector<1x128x128xi32>
    %cst_6 = arith.constant 0xFF800000 : f32
    %13 = vector.broadcast %cst_6 : f32 to vector<1x128x128xf32>
    %14 = arith.select %12, %9, %13 : vector<1x128x128xi1>, vector<1x128x128xf32>
    %cst_7 = arith.constant dense<0xFF800000> : vector<1x128xf32>
    %15 = vector.multi_reduction <maximumf>, %14, %cst_7 [1] : vector<1x128x128xf32> to vector<1x128xf32>
    %16 = vector.shape_cast %15 : vector<1x128xf32> to vector<1x1x128xf32>
    %17 = vector.broadcast %16 : vector<1x1x128xf32> to vector<1x128x128xf32>
    %18 = arith.subf %14, %17 : vector<1x128x128xf32>
    %19 = math.exp %18 : vector<1x128x128xf32>
    %cst_8 = arith.constant dense<0.000000e+00> : vector<1x128xf32>
    %20 = vector.multi_reduction <add>, %19, %cst_8 [1] : vector<1x128x128xf32> to vector<1x128xf32>
    %21 = vector.shape_cast %20 : vector<1x128xf32> to vector<1x1x128xf32>
    %22 = tpu.reciprocal %21 {approx = true} : vector<1x1x128xf32> -> vector<1x1x128xf32>
    %23 = vector.broadcast %22 : vector<1x1x128xf32> to vector<1x128x128xf32>
    %24 = arith.mulf %19, %23 : vector<1x128x128xf32>
    %c0_9 = arith.constant 0 : index
    %c0_10 = arith.constant 0 : index
    %c0_11 = arith.constant 0 : index
    %25 = vector.load %arg2[%c0_9, %c0_10, %c0_11] : memref<1x128x128xbf16, #tpu.memory_space<vmem>>, vector<1x128x128xbf16>
    %26 = arith.truncf %24 : vector<1x128x128xf32> to vector<1x128x128xbf16>
    %cst_12 = arith.constant dense<0.000000e+00> : vector<1x128x128xf32>
    %27 = tpu.matmul %26, %25, %cst_12 {dimension_numbers = #tpu.dot_dimension_numbers<[1], [1], [2], [2], [0, 0, 0, 2, 1, 2], [0], [0]>} : vector<1x128x128xbf16>, vector<1x128x128xbf16>, vector<1x128x128xf32> -> vector<1x128x128xf32>
    %c0_13 = arith.constant 0 : index
    %c0_14 = arith.constant 0 : index
    %c0_15 = arith.constant 0 : index
    %28 = vector.load %arg7[%c0_13, %c0_14, %c0_15] : memref<1x128x128xf32, #tpu.memory_space<vmem>>, vector<1x128x128xf32>
    tpu.vector_store %arg7[%c0_13, %c0_14, %c0_15], %27 {strides = array<i32>} : memref<1x128x128xf32, #tpu.memory_space<vmem>>, vector<1x128x128xf32>,
    %29 = vector.shape_cast %24 : vector<1x128x128xf32> to vector<128x128xf32>
    %30 = tpu.transpose %29, [1, 0] : vector<128x128xf32> -> vector<128x128xf32>
    %c0_16 = arith.constant 0 : index
    %c0_17 = arith.constant 0 : index
    %c0_18 = arith.constant 0 : index
    %31 = vector.load %arg8[%c0_16, %c0_17, %c0_18] : memref<1x128x128xf32, #tpu.memory_space<vmem>>, vector<1x128x128xf32>
    %32 = vector.shape_cast %31 : vector<1x128x128xf32> to vector<128x128xf32>
    %33 = vector.shape_cast %30 : vector<128x128xf32> to vector<1x128x128xf32>
    tpu.vector_store %arg8[%c0_16, %c0_17, %c0_18], %33 {strides = array<i32>} : memref<1x128x128xf32, #tpu.memory_space<vmem>>, vector<1x128x128xf32>,
    return
  }
  func.func @transform_0(%arg0: i32, %arg1: i32) -> (i32, i32, i32) {
    %c0_i32 = arith.constant 0 : i32
    %c0_i32_0 = arith.constant 0 : i32
    %c0_i32_1 = arith.constant 0 : i32
    return %arg0, %c0_i32, %c0_i32_0 : i32, i32, i32
  }
  func.func @transform_1(%arg0: i32, %arg1: i32) -> (i32, i32) {
    %c0_i32 = arith.constant 0 : i32
    %c0_i32_0 = arith.constant 0 : i32
    %c0_i32_1 = arith.constant 0 : i32
    return %c0_i32, %c0_i32_0 : i32, i32
  }
  func.func @transform_2(%arg0: i32, %arg1: i32) -> (i32, i32) {
    %c0_i32 = arith.constant 0 : i32
    %c0_i32_0 = arith.constant 0 : i32
    %c0_i32_1 = arith.constant 0 : i32
    return %c0_i32, %c0_i32_0 : i32, i32
  }
  func.func @transform_3(%arg0: i32, %arg1: i32) -> (i32, i32) {
    %c0_i32 = arith.constant 0 : i32
    %c0_i32_0 = arith.constant 0 : i32
    return %c0_i32, %arg1 : i32, i32
  }
  func.func @transform_4(%arg0: i32, %arg1: i32) -> (i32, i32) {
    %c0_i32 = arith.constant 0 : i32
    %c0_i32_0 = arith.constant 0 : i32
    return %c0_i32, %arg1 : i32, i32
  }
  func.func @transform_5(%arg0: i32, %arg1: i32) -> (i32, i32, i32) {
    %c0_i32 = arith.constant 0 : i32
    %c0_i32_0 = arith.constant 0 : i32
    return %arg0, %arg1, %c0_i32 : i32, i32, i32
  }
  func.func @transform_6(%arg0: i32, %arg1: i32) -> (i32, i32, i32) {
    %c0_i32 = arith.constant 0 : i32
    %c0_i32_0 = arith.constant 0 : i32
    return %arg0, %arg1, %c0_i32 : i32, i32, i32
  }
}

</mosaic_0001>

<bundles_post_ra>
// kernel: tpu_custom_call.1
= control target key start
LH: loop header
LB: loop body
LE: loop exit
PB: predicated region body
PF: predicated region fallthrough
CT: control target
= control target key end

     0   :  { %s2320_s0 = inlined_call_operand.hbm [shape: bf16[2,128,128], index: 0, kind: input, shape index: {}]   ;;  %s2321_s1 = inlined_call_operand.hbm [shape: bf16[128,128], index: 1, kind: input, shape index: {}]   ;;  %s2322_s2 = inlined_call_operand.vmem [shape: f32[1,128], index: 2, kind: input, shape index: {}]   ;;  %s2323_s3 = inlined_call_operand.hbm [shape: bf16[128,128], index: 3, kind: input, shape index: {}]   ;;  %s2324_s4 = inlined_call_operand.vmem [shape: f32[1,128], index: 4, kind: input, shape index: {}]   ;;  %s2325_s5 = inlined_call_operand.hbm [shape: f32[2,128,128], index: 5, kind: output, shape index: {0}]   ;;  %s2326_s6 = inlined_call_operand.hbm [shape: f32[2,128,128], index: 6, kind: output, shape index: {1}]  }
   0x1   :  { %2330 = sst [smem:[#allocation17_spill]] %s2321_s1 }
   0x2   :  { %2331 = sst [smem:[#allocation18_spill]] %s2323_s3 }
   0x3   :  { %12 = vsyncpa [#allocation4], 0 }
   0x4   :  { %14 = vsyncpa [#allocation4 + $0x1], 0 }
   0x5   :  { %15 = vsyncpa [#allocation7], 0 }
   0x6   :  { %16 = vsyncpa [#allocation5], 0 }
   0x7   :  { %18 = vsyncpa [#allocation5 + $0x1], 0 }
   0x8   :  { %19 = vsyncpa [#allocation11], 0 }
   0x9   :  { %21 = vsyncpa [#allocation11 + $0x1], 0  ;;  %s2060_s21 = smov 0   ;;  %s2062_s22 = smov 0  }
   0xa   :  { %s2064_s23 = smov 0   ;;  %s2066_s24 = smov 0  }
   0xb   :  { %s2068_s25 = smov 0   ;;  %s2070_s26 = smov 0  }
   0xc LB: > { %s1377_s27 = sadd.s32 4294967295, %s2017_s26   ;;  %s1378_s28 = sadd.s32 4294967294, %s2017_s26   ;;  %s2017_s26 = sphi %s2070_s26, %s27_s26   ;;  %s2013_s25 = sphi %s2068_s25, %s2347_s25   ;;  %s2009_s24 = sphi %s2066_s24, %s2346_s24   ;;  %s2005_s23 = sphi %s2064_s23, %s2345_s23   ;;  %s2001_s22 = sphi %s2062_s22, %s2344_s22   ;;  %s1997_s21 = sphi %s2060_s21, %s2343_s21  }
   0xd   : > { %p59_p0 = scmp.ne.s32.totalorder %s2001_s22, %s1997_s21  ;;  %p2096_p1 = scmp.eq.s32.totalorder %s1377_s27, 0 }
   0xe   : > { %p185_p2 = scmp.eq.s32.totalorder %s1378_s28, 1  ;;  %p1379_p4 = scmp.ge.s32.totalorder %s2017_s26, 1 }
   0xf   : > { %p2102_p3 = por %p2096_p1, %p59_p0  ;;  %p220_p6 = scmp.lt.s32.totalorder %s2017_s26, 3 }
  0x10   : > { %p2107_p5 = por %p185_p2, %p59_p0  ;;  %s2335_s1 = sld [smem:[#allocation17_spill]] }
  0x11   : > { %p2115_p7 = pnand %p1379_p4, %p220_p6  ;;  %s2019_s12 = smov [#allocation6]  }
  0x12   : > { %s233_s13 = sshll.u32 %s2019_s12, 4  ;;  %p1383_p10 = scmp.ge.s32.totalorder %s2017_s26, 2  ;;  %s234_s13 = int_to_ptr.vmem [resolvable:$true] %s233_s13 }
  0x13   : > { %p1689_p8 = pneg %p2115_p7  ;;  %s2337_s3 = sld [smem:[#allocation18_spill]] }
  0x14   : > { %s2327_s17 = smov 64   ;;  %s2328_s18 = smov 4  }
  0x15   : > { %p1690_p9 = pnand %p1689_p8, %p2096_p1  ;;  %s2022_s19 = smov [#allocation8]  }
  0x16   : > { %s231_s10 = sshll.u32 %s2335_s1, 4  ;;  %s252_s20 = sshll.u32 %s2022_s19, 4  ;;  %s232_s10 = int_to_ptr.hbm [resolvable:$true] %s231_s10  ;;  %s253_s20 = int_to_ptr.vmem [resolvable:$true] %s252_s20 }
  0x17   : > { %1692 = dma.hbm_to_vmem [thread:$0]  (!%p1690_p9), %s232_s10, 1024, %s234_s13, [#allocation7], %s2327_s17, %s2327_s17, %s2328_s18  }
  0x18   : > { %p179_p11 = scmp.eq.s32.totalorder %s1377_s27, 1  ;;  %s39_s28 = sadd.s32 1, %s2013_s25 }
  0x19   : > { %s250_s16 = sshll.u32 %s2337_s3, 4  ;;  %p41_p12 = scmp.ge.s32.totalorder %s39_s28, 2  ;;  %s251_s16 = int_to_ptr.hbm [resolvable:$true] %s250_s16 }
  0x1a   : > { %1695 = dma.hbm_to_vmem [thread:$0]  (!%p1690_p9), %s251_s16, 1024, %s253_s20, [#allocation7], %s2327_s17, %s2327_s17, %s2328_s18  }
  0x1b   : > { %s46_s8 = sadd.s32 1, %s2005_s23  ;;  %p53_p13 = scmp.ne.s32.totalorder %s2005_s23, %s2001_s22 }
  0x1c   : > { %p54_p0 = scmp.eq.s32.totalorder %s2017_s26, 0  ;;  %s2349_s28 = smov (%p41_p12, %s39_s28), 0 }
  0x1d   : > { %2338 = sst [smem:[#allocation16_spill]] %s2349_s28  ;;  %p2142_p2 = por %p179_p11, %p53_p13 }
  0x1e   : > { %p1709_p4 = scmp.lt.s32.totalorder %s2017_s26, 2  ;;  %s43_s10 = ssub.s32 %s2013_s25, %s2349_s28 }
  0x1f   : > { %s272_s12 = sand.u32 1, %s2005_s23   ;;  %p44_p6 = scmp.eq.s32.totalorder %s43_s10, 0 }
  0x20   : > { %p55_p8 = por %p54_p0, %p53_p13  ;;  %s1384_s13 = sshll.u32 %s272_s12, 6 }
  0x21   : > { %s1561_s27 = sshll.u32 %s2013_s25, 6  ;;  %s276_s17 = scalar_lea.vmem [#allocation3], %s1384_s13 }
  0x22   : > { %s2152_s14 = scalar_select %p44_p6, %s2005_s23, %s46_s8  }
  0x23   : > { %s281_s19 = scalar_lea.hbm %s2320_s0, %s1561_s27  ;;  %s284_s18 = sshll.u32 %s276_s17, 4  ;;  %s285_s18 = int_to_ptr.vmem [resolvable:$true] %s284_s18 }
  0x24   : > { %s282_s20 = sshll.u32 %s281_s19, 4  ;;  %p1697_p9 = pnand %p1709_p4, %p55_p8  ;;  %s283_s20 = int_to_ptr.hbm [resolvable:$true] %s282_s20 }
  0x25   : > { %s273_s1 = scalar_lea.sflag [#allocation4], %s272_s12  ;;  %s2340_s3 = smov 4  }
  0x26   : > { %s2341_s28 = smov 64   ;;  %296 = sbr.rel (%p2115_p7) target bundleno = 879 (0x36f), region = 40 }
  0x27   : > { %1699 = dma.hbm_to_vmem [thread:$0]  (!%p1697_p9), %s283_s20, 1024, %s285_s18, %s273_s1, %s2341_s28, %s2341_s28, %s2340_s3  }
  0x28   : > { %s2165_s8 = sand.u32 (!%p2115_p7), 1, %s2001_s22  }
  0x29   : > { %s1388_s10 = sshll.u32 (!%p2115_p7), %s2165_s8, 6  ;;  %s299_s17 = scalar_lea.sflag (!%p2115_p7), [#allocation4], %s2165_s8 }
  0x2a   : > { %s2169_s13 = scalar_lea.vmem (!%p2115_p7), [#allocation3], %s1388_s10 }
  0x2b   : > { %1980 = dma.done.wait (%p2102_p3), %s299_s17, 1024  }
  0x2c   : > { %1982 = vsyncadd (%p2102_p3), %s299_s17, 4294966272 }
  0x2d   : > { %1984 = dma.done.wait (%p2096_p1), [#allocation7], 2048  }
  0x2e   : > { %1986 = vsyncadd (%p2096_p1), [#allocation7], 4294965248  ;;  %v1577_v0 = vld [vmem:[#allocation6 + $0x38] sm:$0xff]  ;;  %v1576_v1 = vld [vmem:[#allocation6 + $0x30] sm:$0xff]  ;;  %v769_v26 = vlaneseq  ;;  %s1391_s11 = sshll.u32 %s2165_s8, 7  ;;  %s1602_s12 = sshll.u32 %s2009_s24, 7 }
  0x2f   : > { %491 = vmatpush.bf16.msra.mxu0 %v1577_v0  ;;  %1651 = vmatpush.bf16.msra.mxu3 %v1577_v0  ;;  %v1593_v2 = vld [vmem:[#allocation8 + $0x38] sm:$0xff]  ;;  %v1575_v3 = vld [vmem:[#allocation6 + $0x28] sm:$0xff]  ;;  %v1574_v4 = vld [vmem:[#allocation6 + $0x20] sm:$0xff]  ;;  %s2220_s18 = scalar_lea.vmem [#allocation10], %s1391_s11  ;;  %s2227_s28 = scalar_lea.vmem [#allocation9], %s1391_s11 }
  0x30   : > { %720 = vmatpush.bf16.msra.mxu1 %v1593_v2  ;;  %v1573_v5 = vld [vmem:[#allocation6 + $0x18] sm:$0xff]  ;;  %v1572_v6 = vld [vmem:[#allocation6 + $0x10] sm:$0xff]  ;;  %v1571_v7 = vld [vmem:[#allocation6 + $0x8] sm:$0xff]  ;;  %v770_v28 = vshrl.u32 %v769_v26, 7  ;;  %s1220_s16 = scalar_lea.hbm %s2326_s6, %s1602_s12  ;;  %s1221_s19 = sshll.u32 %s2220_s18, 4  ;;  %s1222_s19 = int_to_ptr.vmem [resolvable:$true] %s1221_s19 }
  0x31   : > { %v1570_v8 = vld [vmem:[#allocation6] sm:$0xff]  ;;  %v1592_v10 = vld [vmem:[#allocation8 + $0x30] sm:$0xff]  ;;  %v1591_v11 = vld [vmem:[#allocation8 + $0x28] sm:$0xff]  ;;  %s1223_s20 = sshll.u32 %s1220_s16, 4  ;;  %s1188_s10 = scalar_lea.sflag [#allocation11], %s2165_s8  ;;  %s1224_s20 = int_to_ptr.hbm [resolvable:$true] %s1223_s20 }
  0x32   : > { %v1562_v9 = vld [vmem:[%s2169_s13] sm:$0xff]  ;;  %v1589_v13 = vld [vmem:[#allocation8 + $0x18] sm:$0xff]  ;;  %v1588_v14 = vld [vmem:[#allocation8 + $0x10] sm:$0xff]  ;;  %v771_v29 = vadd.s32 8, %v770_v28  ;;  %s1913_s17 = sshra.s32 %s1224_s20, 4  ;;  %s1919_s29 = scalar_lea.hbm %s2326_s6, 256  ;;  %s1914_s17 = int_to_ptr.hbm [resolvable:$true] %s1913_s17 }
  0x33   : > { %492 = vmatpush.bf16.msra.mxu0 %v1576_v1  ;;  %1652 = vmatpush.bf16.msra.mxu3 %v1576_v1  ;;  %v1590_v12 = vld [vmem:[#allocation8 + $0x20] sm:$0xff]  ;;  %v1587_v15 = vld [vmem:[#allocation8 + $0x8] sm:$0xff]  ;;  %v1601_v28 = vld [vmem:[%s2169_s13 + $0x38] sm:$0xff]  ;;  %p1920_p11 = scmp.lt.s32.totalorder %s1914_s17, %s2326_s6 }
  0x34   : > { %721 = vmatpush.bf16.msra.mxu1 %v1592_v10  ;;  %v1586_v16 = vld [vmem:[#allocation8] sm:$0xff]  ;;  %vm787_vm0 = vcmp.lt.s32.totalorder %v771_v29, 10  ;;  %1069 = vmatpush.bf16.msra.mxu2 %v1601_v28  ;;  %v1600_v29 = vld [vmem:[%s2169_s13 + $0x30] sm:$0xff] }
  0x35   : > { %v2183_v18 = vld [vmem:[%s2322_s2] ss:$0 sm:$0xff] }
  0x36   : > { %v1768_v30 = vld [vmem:[%s2324_s4] ss:$0 sm:$0xff] }
  0x37   : > { %493 = vmatpush.bf16.msra.mxu0 %v1575_v3  ;;  %1653 = vmatpush.bf16.msra.mxu3 %v1575_v3  ;;  %v1566_v26 = vld [vmem:[%s2169_s13 + $0x20] sm:$0xff] }
  0x38   : > { %722 = vmatpush.bf16.msra.mxu1 %v1591_v11  ;;  %1070 = vmatpush.bf16.msra.mxu2 %v1600_v29 }
  0x3b   : > { %494 = vmatpush.bf16.msra.mxu0 %v1574_v4  ;;  %1654 = vmatpush.bf16.msra.mxu3 %v1574_v4 }
  0x3c   : > { %723 = vmatpush.bf16.msra.mxu1 %v1590_v12 }
  0x3f   : > { %495 = vmatpush.bf16.msra.mxu0 %v1573_v5  ;;  %1655 = vmatpush.bf16.msra.mxu3 %v1573_v5 }
  0x40   : > { %724 = vmatpush.bf16.msra.mxu1 %v1589_v13 }
  0x43   : > { %496 = vmatpush.bf16.msra.mxu0 %v1572_v6  ;;  %1656 = vmatpush.bf16.msra.mxu3 %v1572_v6 }
  0x44   : > { %725 = vmatpush.bf16.msra.mxu1 %v1588_v14 }
  0x47   : > { %497 = vmatpush.bf16.msra.mxu0 %v1571_v7  ;;  %1657 = vmatpush.bf16.msra.mxu3 %v1571_v7 }
  0x48   : > { %726 = vmatpush.bf16.msra.mxu1 %v1587_v15 }
  0x4b   : > { %498 = vmatpush.bf16.msra.mxu0 %v1570_v8  ;;  %1658 = vmatpush.bf16.msra.mxu3 %v1570_v8 }
  0x4c   : > { %727 = vmatpush.bf16.msra.mxu1 %v1586_v16 }
  0x4e   : > { %499 = vmatmul.bf16.vlgmr.msra.gmra.mxu0 %v1562_v9 }
  0x4f   : > { %1659 = vmatpush.bf16.msrb.mxu3 %v1593_v2 }
  0x53   : > { %1660 = vmatpush.bf16.msrb.mxu3 %v1592_v10 }
  0x57   : > { %1661 = vmatpush.bf16.msrb.mxu3 %v1591_v11 }
  0x5b   : > { %1662 = vmatpush.bf16.msrb.mxu3 %v1590_v12 }
  0x5f   : > { %1663 = vmatpush.bf16.msrb.mxu3 %v1589_v13 }
  0x63   : > { %1664 = vmatpush.bf16.msrb.mxu3 %v1588_v14 }
  0x67   : > { %1665 = vmatpush.bf16.msrb.mxu3 %v1587_v15 }
  0x6b   : > { %1666 = vmatpush.bf16.msrb.mxu3 %v1586_v16 }
  0xcb   : > { %v500_v17 = vpop.f32.mrf.mxu0 }
  0xcc   : > { %v501_v19 = vadd.f32 %v2183_v18, %v500_v17 }
  0xce   : > { %1769 = vtanh.f32 %v501_v19 }
  0xd3   : > { %v502_v20 = vpop.f32.mrf.mxu0 }
  0xd4   : > { %v503_v21 = vadd.f32 %v2183_v18, %v502_v20  ;;  %v1770_v22 = vpop.eup %1769 }
  0xd6   : > { %1771 = vtanh.f32 %v503_v21  ;;  %v1563_v21 = vld [vmem:[%s2169_s13 + $0x8] sm:$0xff] }
  0xd7   : > { %504 = vmatmul.bf16.gmra.mxu0 %v1563_v21 }
  0xdc   : > { %v1772_v23 = vpop.eup %1771 }
  0xdd   : > { %v1607_v24 = vpack.c.bf16 %v1772_v23, %v1770_v22  ;;  %v1568_v22 = vld [vmem:[%s2169_s13 + $0x30] sm:$0xff] }
  0xde   : > { %529 = vmatmul.bf16.vlgmr.msra.gmra.mxu3 %v1568_v22  ;;  %v1564_v23 = vld [vmem:[%s2169_s13 + $0x10] sm:$0xff] }
  0xdf   : > { %1608 = vst [vmem:[#allocation2 + $0x30] sm:$0xff] %v1607_v24   ;;  %v1569_v24 = vld [vmem:[%s2169_s13 + $0x38] sm:$0xff]  ;;  %1667 = vmatpush.bf16.msra.mxu3 %v1601_v28 }
  0xe3   : > { %1668 = vmatpush.bf16.msra.mxu3 %v1600_v29 }
  0xe6   : > { %v1578_v25 = vld [vmem:[#allocation2 + $0x30] sm:$0xff] }
  0xe7   : > { %728 = vmatmul.bf16.vlgmr.msra.gmra.mxu1 %v1578_v25  ;;  %509 = vmatmul.bf16.gmra.mxu0 %v1564_v23  ;;  %v1565_v25 = vld [vmem:[%s2169_s13 + $0x18] sm:$0xff] }
  0xee   : > { %534 = vmatmul.bf16.gmra.mxu3 %v1569_v24 }
  0xf7   : > { %514 = vmatmul.bf16.gmra.mxu0 %v1565_v25 }
 0x107   : > { %519 = vmatmul.bf16.gmra.mxu0 %v1566_v26 }
 0x164   : > { %v729_v27 = vpop.f32.mrf.mxu1 }
 0x165   : > { %v730_v33 = vadd.f32 %v1768_v30, %v729_v27  ;;  %v1567_v27 = vld [vmem:[%s2169_s13 + $0x28] sm:$0xff] }
 0x166   : > { %524 = vmatmul.bf16.gmra.mxu0 %v1567_v27 }
 0x16c   : > { %v731_v31 = vpop.f32.mrf.mxu1 }
 0x16d   : > { %v732_v32 = vadd.f32 %v1768_v30, %v731_v31  ;;  %v1599_v30 = vld [vmem:[%s2169_s13 + $0x28] sm:$0xff]  ;;  %v1598_v31 = vld [vmem:[%s2169_s13 + $0x20] sm:$0xff] }
 0x16e   : > { %1071 = vmatpush.bf16.msra.mxu2 %v1599_v30  ;;  %1669 = vmatpush.bf16.msra.mxu3 %v1599_v30 }
 0x16f   : > { %v803_v34 = vsel %vm787_vm0, %v732_v32, -inf  ;;  %v1597_v32 = vld [vmem:[%s2169_s13 + $0x18] sm:$0xff] }
 0x170   : > { %v830_v35 = vmax.f32 %v730_v33, %v803_v34 }
 0x172   : > { %v833_v36 = vrot.slane %v830_v35, 4  ;;  %1072 = vmatpush.bf16.msra.mxu2 %v1598_v31  ;;  %1670 = vmatpush.bf16.msra.mxu3 %v1598_v31 }
 0x174   : > { %v834_v37 = vmax.f32 %v830_v35, %v833_v36  ;;  %v1594_v35 = vld [vmem:[%s2169_s13] sm:$0xff]  ;;  %v505_v36 = vpop.f32.mrf.mxu0 }
 0x176   : > { %v835_v38 = vrot.slane %v834_v37, 2  ;;  %1073 = vmatpush.bf16.msra.mxu2 %v1597_v32  ;;  %1671 = vmatpush.bf16.msra.mxu3 %v1597_v32 }
 0x178   : > { %v836_v39 = vmax.f32 %v834_v37, %v835_v38  ;;  %v506_v37 = vadd.f32 %v2183_v18, %v505_v36 }
 0x17a   : > { %v837_v40 = vrot.slane %v836_v39, 1 }
 0x17c   : > { %v838_v41 = vmax.f32 %v836_v39, %v837_v40  ;;  %v507_v38 = vpop.f32.mrf.mxu0  ;;  %v530_v40 = vpop.f32.mrf.mxu3 }
 0x17d   : > { %v508_v39 = vadd.f32 %v2183_v18, %v507_v38 }
 0x17e   : > { %v840_v42 = vsub.f32 %v803_v34, %v838_v41  ;;  %v841_v43 = vsub.f32 -inf, %v838_v41  ;;  %v839_v44 = vsub.f32 %v730_v33, %v838_v41  ;;  %v1596_v33 = vld [vmem:[%s2169_s13 + $0x10] sm:$0xff]  ;;  %v1595_v34 = vld [vmem:[%s2169_s13 + $0x8] sm:$0xff]  ;;  %s1915_s13 = scalar_lea.hbm %s1914_s17, 128 }
 0x17f   : > { %1074 = vmatpush.bf16.msra.mxu2 %v1596_v33  ;;  %1672 = vmatpush.bf16.msra.mxu3 %v1596_v33  ;;  %p1916_p1 = scmp.ne.s32.totalorder %s1914_s17, %s1915_s13  ;;  %p1921_p12 = scmp.lt.s32.totalorder %s1919_s29, %s1915_s13 }
 0x180   : > { %v857_v45 = vmul.f32 1.442695, %v840_v42  ;;  %v855_v46 = vmul.f32 1.442695, %v839_v44  ;;  %v859_v47 = vmul.f32 1.442695, %v841_v43  ;;  %v531_v42 = vadd.f32 %v2183_v18, %v530_v40 }
 0x181   : > { %p1917_p3 = pnand %p1916_p1, %p2142_p2  ;;  %p1922_p13 = por %p1921_p12, %p1920_p11 }
 0x182   : > { %1773 = vpow2.f32 %v857_v45 }
 0x183   : > { %1775 = vpow2.f32 %v855_v46  ;;  %1075 = vmatpush.bf16.msra.mxu2 %v1595_v34  ;;  %1673 = vmatpush.bf16.msra.mxu3 %v1595_v34  ;;  %p1918_p7 = pneg %p1917_p3 }
 0x184   : > { %1777 = vpow2.f32 %v859_v47  ;;  %v510_v43 = vpop.f32.mrf.mxu0  ;;  %v532_v46 = vpop.f32.mrf.mxu3 }
 0x185   : > { %v533_v47 = vadd.f32 %v2183_v18, %v532_v46  ;;  %p1923_p0 = pnand %p1922_p13, %p1918_p7 }
 0x187   : > { %1076 = vmatpush.bf16.msra.mxu2 %v1594_v35  ;;  %1674 = vmatpush.bf16.msra.mxu3 %v1594_v35 }
 0x188   : > { %v1774_v48 = vpop.eup %1773 }
 0x189   : > { %v1776_v49 = vpop.eup %1775 }
 0x18a   : > { %v887_v50 = vadd.f32 %v1776_v49, %v1774_v48  ;;  %v1778_v51 = vpop.eup %1777 }
 0x18c   : > { %v888_v52 = vadd.f32 %v1778_v51, %v887_v50  ;;  %v512_v50 = vpop.f32.mrf.mxu0 }
 0x18e   : > { %v889_v53 = vadd.f32 %v1778_v51, %v888_v52  ;;  %v513_v52 = vadd.f32 %v2183_v18, %v512_v50 }
 0x190   : > { %v890_v54 = vadd.f32 %v1778_v51, %v889_v53  ;;  %v535_v53 = vpop.f32.mrf.mxu3 }
 0x192   : > { %v891_v55 = vadd.f32 %v1778_v51, %v890_v54 }
 0x194   : > { %v892_v56 = vadd.f32 %v1778_v51, %v891_v55 }
 0x196   : > { %v893_v57 = vadd.f32 %v1778_v51, %v892_v56 }
 0x198   : > { %v894_v58 = vadd.f32 %v1778_v51, %v893_v57 }
 0x19a   : > { %v895_v59 = vadd.f32 %v1778_v51, %v894_v58  ;;  %v536_v58 = vadd.f32 %v2183_v18, %v535_v53 }
 0x19c   : > { %v896_v60 = vadd.f32 %v1778_v51, %v895_v59  ;;  %v515_v59 = vpop.f32.mrf.mxu0 }
 0x19e   : > { %v897_v61 = vadd.f32 %v1778_v51, %v896_v60 }
 0x1a0   : > { %v898_v62 = vadd.f32 %v1778_v51, %v897_v61 }
 0x1a2   : > { %v899_v63 = vadd.f32 %v1778_v51, %v898_v62  ;;  %v537_v62 = vpop.f32.mrf.mxu3 }
 0x1a4   : > { %v900_v0 = vadd.f32 %v1778_v51, %v899_v63  ;;  %v538_v63 = vadd.f32 %v2183_v18, %v537_v62 }
 0x1a6   : > { %v901_v1 = vadd.f32 %v1778_v51, %v900_v0  ;;  %v516_v0 = vadd.f32 %v2183_v18, %v515_v59 }
 0x1a8   : > { %v902_v2 = vrot.slane %v901_v1, 4 }
 0x1aa   : > { %v903_v3 = vadd.f32 %v902_v2, %v901_v1 }
 0x1ac   : > { %v904_v4 = vrot.slane %v903_v3, 2 }
 0x1ae   : > { %v905_v5 = vadd.f32 %v904_v4, %v903_v3  ;;  %v517_v3 = vpop.f32.mrf.mxu0 }
 0x1b0   : > { %v906_v6 = vrot.slane %v905_v5, 1 }
 0x1b2   : > { %v907_v7 = vadd.f32 %v906_v6, %v905_v5  ;;  %v518_v5 = vadd.f32 %v2183_v18, %v517_v3 }
 0x1b4   : > { %1779 = vrcp.f32 %v907_v7 }
 0x1b5   : > { %1781 = vtanh.f32 %v506_v37 }
 0x1b6   : > { %1783 = vtanh.f32 %v508_v39 }
 0x1b7   : > { %1785 = vtanh.f32 %v531_v42 }
 0x1b8   : > { %1787 = vtanh.f32 %v533_v47 }
 0x1ba   : > { %v1780_v8 = vpop.eup %1779 }
 0x1bb   : > { %v909_v9 = vmul.f32 %v1780_v8, %v1776_v49  ;;  %v910_v10 = vmul.f32 %v1780_v8, %v1774_v48  ;;  %v911_v16 = vmul.f32 %v1780_v8, %v1778_v51  ;;  %v1782_v41 = vpop.eup %1781  ;;  %v511_v48 = vadd.f32 %v2183_v18, %v510_v43 }
 0x1bc   : > { %v1784_v44 = vpop.eup %1783 }
 0x1bd   : > { %1134 = vxpose.xlu1.b32.start [1/16] %v909_v9, 128  ;;  %v941_v11 = vpack.c.bf16 %v909_v9, %v909_v9  ;;  %v942_v12 = vpack.c.bf16 %v910_v10, %v910_v10  ;;  %v943_v17 = vpack.c.bf16 %v911_v16, %v911_v16  ;;  %v1612_v45 = vpack.c.bf16 %v1784_v44, %v1782_v41  ;;  %v1786_v51 = vpop.eup %1785 }
 0x1be   : > { %1789 = vtanh.f32 %v511_v48  ;;  %v1788_v54 = vpop.eup %1787 }
 0x1bf   : > { %v973_v13 = vunpack.c.l.b16 %v941_v11  ;;  %v974_v14 = vunpack.c.l.b16 %v942_v12  ;;  %v975_v19 = vunpack.c.l.b16 %v943_v17  ;;  %1644 = vst [vmem:[#allocation2] sm:$0xff] %v1612_v45   ;;  %1791 = vtanh.f32 %v513_v52 }
 0x1c0   : > { %v1637_v56 = vpack.c.bf16 %v1788_v54, %v1786_v51  ;;  %1793 = vtanh.f32 %v536_v58 }
 0x1c1   : > { %v989_v15 = vpack.c.b16 %v974_v14, %v973_v13  ;;  %v990_v20 = vpack.c.b16 %v975_v19, %v975_v19  ;;  %1795 = vtanh.f32 %v538_v63 }
 0x1c2   : > { %1649 = vst [vmem:[#allocation2 + $0x28] sm:$0xff] %v1637_v56   ;;  %1797 = vtanh.f32 %v516_v0 }
 0x1c3   : > { %1005 = vxpose.xlu0.c.b16.start [1/8] %v989_v15, 128  ;;  %1799 = vtanh.f32 %v518_v5 }
 0x1c4   : > { %v1790_v57 = vpop.eup %1789 }
 0x1c5   : > { %1135 = vxpose.xlu1.b32.cont [2/16] %v910_v10, 128  ;;  %v1792_v60 = vpop.eup %1791  ;;  %v520_v10 = vpop.f32.mrf.mxu0 }
 0x1c6   : > { %v1579_v55 = vld [vmem:[#allocation2] sm:$0xff]  ;;  %v1617_v61 = vpack.c.bf16 %v1792_v60, %v1790_v57  ;;  %v1794_v4 = vpop.eup %1793  ;;  %v521_v13 = vadd.f32 %v2183_v18, %v520_v10 }
 0x1c7   : > { %733 = vmatmul.bf16.gmra.mxu1 %v1579_v55  ;;  %v1796_v6 = vpop.eup %1795 }
 0x1c8   : > { %1645 = vst [vmem:[#allocation2 + $0x18] sm:$0xff] %v1617_v61   ;;  %v1642_v8 = vpack.c.bf16 %v1796_v6, %v1794_v4  ;;  %v1798_v9 = vpop.eup %1797  ;;  %1801 = vtanh.f32 %v521_v13 }
 0x1c9   : > { %v1584_v1 = vld [vmem:[#allocation2 + $0x28] sm:$0xff]  ;;  %v1800_v11 = vpop.eup %1799 }
 0x1ca   : > { %758 = vmatmul.bf16.vlgmr.msrb.gmra.mxu3 %v1584_v1  ;;  %1650 = vst [vmem:[#allocation2 + $0x38] sm:$0xff] %v1642_v8   ;;  %v1622_v12 = vpack.c.bf16 %v1800_v11, %v1798_v9 }
 0x1cc   : > { %1646 = vst [vmem:[#allocation2 + $0x10] sm:$0xff] %v1622_v12  }
 0x1cd   : > { %1136 = vxpose.xlu1.b32.cont [3/16] %v911_v16, 128 }
 0x1cf   : > { %v1580_v7 = vld [vmem:[#allocation2 + $0x18] sm:$0xff] }
 0x1d1   : > { %v1585_v14 = vld [vmem:[#allocation2 + $0x38] sm:$0xff] }
 0x1d3   : > { %1006 = vxpose.xlu0.c.b16.cont [2/8] %v990_v20, 128  ;;  %v1581_v19 = vld [vmem:[#allocation2 + $0x10] sm:$0xff] }
 0x1d5   : > { %1137 = vxpose.xlu1.b32.cont [4/16] %v911_v16, 128 }
 0x1d7   : > { %738 = vmatmul.bf16.gmra.mxu1 %v1580_v7 }
 0x1da   : > { %763 = vmatmul.bf16.gmra.mxu3 %v1585_v14 }
 0x1dd   : > { %1138 = vxpose.xlu1.b32.cont [5/16] %v911_v16, 128 }
 0x1e3   : > { %1007 = vxpose.xlu0.c.b16.cont [3/8] %v990_v20, 128 }
 0x1e5   : > { %1139 = vxpose.xlu1.b32.cont [6/16] %v911_v16, 128 }
 0x1e7   : > { %743 = vmatmul.bf16.gmra.mxu1 %v1581_v19 }
 0x1ed   : > { %1140 = vxpose.xlu1.b32.cont [7/16] %v911_v16, 128 }
 0x1f3   : > { %1008 = vxpose.xlu0.c.b16.cont [4/8] %v990_v20, 128 }
 0x1f5   : > { %1141 = vxpose.xlu1.b32.cont [8/16] %v911_v16, 128 }
 0x1fd   : > { %1142 = vxpose.xlu1.b32.cont [9/16] %v911_v16, 128 }
 0x203   : > { %1009 = vxpose.xlu0.c.b16.cont [5/8] %v990_v20, 128 }
 0x205   : > { %1143 = vxpose.xlu1.b32.cont [10/16] %v911_v16, 128 }
 0x20d   : > { %1144 = vxpose.xlu1.b32.cont [11/16] %v911_v16, 128 }
 0x213   : > { %1010 = vxpose.xlu0.c.b16.cont [6/8] %v990_v20, 128 }
 0x215   : > { %1145 = vxpose.xlu1.b32.cont [12/16] %v911_v16, 128 }
 0x21d   : > { %1146 = vxpose.xlu1.b32.cont [13/16] %v911_v16, 128 }
 0x223   : > { %1011 = vxpose.xlu0.c.b16.cont [7/8] %v990_v20, 128 }
 0x225   : > { %1147 = vxpose.xlu1.b32.cont [14/16] %v911_v16, 128 }
 0x22d   : > { %1148 = vxpose.xlu1.b32.cont [15/16] %v911_v16, 128 }
 0x233   : > { %1012 = vxpose.xlu0.c.b16.end [8/8] %v990_v20, 128  ;;  %v1802_v20 = vpop.eup %1801 }
 0x235   : > { %1149 = vxpose.xlu1.b32.end [16/16] %v911_v16, 128  ;;  %v522_v16 = vpop.f32.mrf.mxu0 }
 0x236   : > { %v523_v17 = vadd.f32 %v2183_v18, %v522_v16 }
 0x238   : > { %1803 = vtanh.f32 %v523_v17 }
 0x23d   : > { %v525_v21 = vpop.f32.mrf.mxu0 }
 0x23e   : > { %v1804_v22 = vpop.eup %1803  ;;  %v526_v24 = vadd.f32 %v2183_v18, %v525_v21 }
 0x23f   : > { %v1627_v23 = vpack.c.bf16 %v1804_v22, %v1802_v20 }
 0x240   : > { %1805 = vtanh.f32 %v526_v24 }
 0x241   : > { %1647 = vst [vmem:[#allocation2 + $0x8] sm:$0xff] %v1627_v23  }
 0x244   : > { %v734_v41 = vpop.f32.mrf.mxu1 }
 0x245   : > { %v527_v26 = vpop.f32.mrf.mxu0 }
 0x246   : > { %v528_v27 = vadd.f32 %v2183_v18, %v527_v26  ;;  %v1806_v29 = vpop.eup %1805 }
 0x248   : > { %1807 = vtanh.f32 %v528_v27  ;;  %v1582_v28 = vld [vmem:[#allocation2 + $0x8] sm:$0xff] }
 0x249   : > { %748 = vmatmul.bf16.gmra.mxu1 %v1582_v28 }
 0x24c   : > { %v736_v44 = vpop.f32.mrf.mxu1 }
 0x24e   : > { %v1808_v30 = vpop.eup %1807 }
 0x24f   : > { %v1632_v31 = vpack.c.bf16 %v1808_v30, %v1806_v29 }
 0x251   : > { %1648 = vst [vmem:[#allocation2 + $0x20] sm:$0xff] %v1632_v31  }
 0x254   : > { %v739_v47 = vpop.f32.mrf.mxu1 }
 0x258   : > { %v1583_v33 = vld [vmem:[#allocation2 + $0x20] sm:$0xff] }
 0x259   : > { %753 = vmatmul.bf16.gmra.mxu1 %v1583_v33 }
 0x25c   : > { %v741_v51 = vpop.f32.mrf.mxu1 }
 0x261   : > { %v1150_v35 = vpop.trf.xlu1 }
 0x262   : > { %1166 = vst [vmem:[%s2220_s18] sm:$0xff] %v1150_v35 }
 0x264   : > { %v744_v55 = vpop.f32.mrf.mxu1 }
 0x269   : > { %v1151_v36 = vpop.trf.xlu1 }
 0x26a   : > { %1167 = vst [vmem:[%s2220_s18 + $0x8] sm:$0xff] %v1151_v36 }
 0x26c   : > { %v746_v59 = vpop.f32.mrf.mxu1 }
 0x26f   : > { %v1013_v49 = vpop.trf.xlu0 }
 0x270   : > { %1077 = vmatmul.bf16.vlgmr.msra.gmra.mxu2 %v1013_v49  ;;  %v759_v49 = vpop.f32.mrf.mxu3 }
 0x271   : > { %v1152_v37 = vpop.trf.xlu1 }
 0x272   : > { %1168 = vst [vmem:[%s2220_s18 + $0x10] sm:$0xff] %v1152_v37 }
 0x278   : > { %v761_v53 = vpop.f32.mrf.mxu3 }
 0x279   : > { %v1153_v39 = vpop.trf.xlu1 }
 0x27a   : > { %1169 = vst [vmem:[%s2220_s18 + $0x18] sm:$0xff] %v1153_v39 }
 0x27f   : > { %v1014_v2 = vpop.trf.xlu0 }
 0x280   : > { %1082 = vmatmul.bf16.gmra.mxu2 %v1014_v2  ;;  %v764_v57 = vpop.f32.mrf.mxu3 }
 0x281   : > { %v1154_v40 = vpop.trf.xlu1 }
 0x282   : > { %1170 = vst [vmem:[%s2220_s18 + $0x20] sm:$0xff] %v1154_v40 }
 0x288   : > { %v766_v61 = vpop.f32.mrf.mxu3 }
 0x289   : > { %v1155_v43 = vpop.trf.xlu1 }
 0x28a   : > { %1171 = vst [vmem:[%s2220_s18 + $0x28] sm:$0xff] %v1155_v43 }
 0x28f   : > { %v1015_v15 = vpop.trf.xlu0 }
 0x290   : > { %1087 = vmatmul.bf16.gmra.mxu2 %v1015_v15 }
 0x291   : > { %v1156_v46 = vpop.trf.xlu1 }
 0x292   : > { %1172 = vst [vmem:[%s2220_s18 + $0x30] sm:$0xff] %v1156_v46 }
 0x299   : > { %v1157_v50 = vpop.trf.xlu1 }
 0x29a   : > { %1173 = vst [vmem:[%s2220_s18 + $0x38] sm:$0xff] %v1157_v50 }
 0x29f   : > { %v1016_v25 = vpop.trf.xlu0 }
 0x2a0   : > { %1092 = vmatmul.bf16.gmra.mxu2 %v1016_v25 }
 0x2a1   : > { %v1158_v54 = vpop.trf.xlu1 }
 0x2a2   : > { %1174 = vst [vmem:[%s2220_s18 + $0x40] sm:$0xff] %v1158_v54 }
 0x2a9   : > { %v1159_v58 = vpop.trf.xlu1 }
 0x2aa   : > { %1175 = vst [vmem:[%s2220_s18 + $0x48] sm:$0xff] %v1159_v58 }
 0x2af   : > { %v1017_v32 = vpop.trf.xlu0 }
 0x2b0   : > { %1097 = vmatmul.bf16.gmra.mxu2 %v1017_v32 }
 0x2b1   : > { %v1160_v62 = vpop.trf.xlu1 }
 0x2b2   : > { %1176 = vst [vmem:[%s2220_s18 + $0x50] sm:$0xff] %v1160_v62 }
 0x2b9   : > { %v1161_v1 = vpop.trf.xlu1 }
 0x2ba   : > { %1177 = vst [vmem:[%s2220_s18 + $0x58] sm:$0xff] %v1161_v1 }
 0x2bf   : > { %v1018_v34 = vpop.trf.xlu0 }
 0x2c0   : > { %1102 = vmatmul.bf16.gmra.mxu2 %v1018_v34 }
 0x2c1   : > { %v1162_v4 = vpop.trf.xlu1 }
 0x2c2   : > { %1178 = vst [vmem:[%s2220_s18 + $0x60] sm:$0xff] %v1162_v4 }
 0x2c6   : > { %v749_v63 = vpop.f32.mrf.mxu1 }
 0x2c9   : > { %v1163_v7 = vpop.trf.xlu1 }
 0x2ca   : > { %1179 = vst [vmem:[%s2220_s18 + $0x68] sm:$0xff] %v1163_v7 }
 0x2ce   : > { %v751_v2 = vpop.f32.mrf.mxu1 }
 0x2cf   : > { %v1019_v18 = vpop.trf.xlu0 }
 0x2d0   : > { %1107 = vmatmul.bf16.vlgmr.msra.gmra.mxu3 %v1019_v18 }
 0x2d1   : > { %v1164_v10 = vpop.trf.xlu1 }
 0x2d2   : > { %1180 = vst [vmem:[%s2220_s18 + $0x70] sm:$0xff] %v1164_v10 }
 0x2d6   : > { %v754_v5 = vpop.f32.mrf.mxu1 }
 0x2d9   : > { %v1165_v12 = vpop.trf.xlu1 }
 0x2da   : > { %1181 = vst [vmem:[%s2220_s18 + $0x78] sm:$0xff] %v1165_v12 }
 0x2de   : > { %v756_v8 = vpop.f32.mrf.mxu1 }
 0x2df   : > { %v1020_v38 = vpop.trf.xlu0 }
 0x2e0   : > { %1112 = vmatmul.bf16.gmra.mxu3 %v1020_v38 }
 0x2f3   : > { %v1078_v42 = vpop.f32.mrf.mxu2 }
 0x2f4   : > { %1118 = vst [vmem:[%s2227_s28] sm:$0xff] %v1078_v42 }
 0x2fb   : > { %v1080_v45 = vpop.f32.mrf.mxu2 }
 0x2fc   : > { %1119 = vst [vmem:[%s2227_s28 + $0x8] sm:$0xff] %v1080_v45 }
 0x303   : > { %v1083_v48 = vpop.f32.mrf.mxu2 }
 0x304   : > { %1120 = vst [vmem:[%s2227_s28 + $0x10] sm:$0xff] %v1083_v48 }
 0x30b   : > { %v1085_v52 = vpop.f32.mrf.mxu2 }
 0x30c   : > { %1121 = vst [vmem:[%s2227_s28 + $0x18] sm:$0xff] %v1085_v52 }
 0x313   : > { %v1088_v56 = vpop.f32.mrf.mxu2 }
 0x314   : > { %1122 = vst [vmem:[%s2227_s28 + $0x20] sm:$0xff] %v1088_v56 }
 0x31b   : > { %v1090_v60 = vpop.f32.mrf.mxu2 }
 0x31c   : > { %1123 = vst [vmem:[%s2227_s28 + $0x28] sm:$0xff] %v1090_v60 }
 0x323   : > { %v1093_v0 = vpop.f32.mrf.mxu2 }
 0x324   : > { %1124 = vst [vmem:[%s2227_s28 + $0x30] sm:$0xff] %v1093_v0 }
 0x32b   : > { %v1095_v3 = vpop.f32.mrf.mxu2 }
 0x32c   : > { %1125 = vst [vmem:[%s2227_s28 + $0x38] sm:$0xff] %v1095_v3 }
 0x333   : > { %v1098_v6 = vpop.f32.mrf.mxu2 }
 0x334   : > { %1126 = vst [vmem:[%s2227_s28 + $0x40] sm:$0xff] %v1098_v6 }
 0x33b   : > { %v1100_v9 = vpop.f32.mrf.mxu2 }
 0x33c   : > { %1127 = vst [vmem:[%s2227_s28 + $0x48] sm:$0xff] %v1100_v9 }
 0x343   : > { %v1103_v11 = vpop.f32.mrf.mxu2 }
 0x344   : > { %1128 = vst [vmem:[%s2227_s28 + $0x50] sm:$0xff] %v1103_v11 }
 0x345   : > { %1926 = shalt.err (!%p1923_p0)
}
 0x346   : > { %s2023_s18 = smov 128   ;;  %s2024_s27 = smov 8  }
 0x347   : > { %1686 = dma.vmem_to_hbm [thread:$0]  (%p2142_p2), %s1222_s19, 2048, %s1224_s20, %s1188_s10, %s2023_s18, %s2023_s18, %s2024_s27  }
 0x348   : > { %s1201_s17 = scalar_lea.hbm %s2325_s5, %s1602_s12  ;;  %s1202_s13 = sshll.u32 %s2227_s28, 4  ;;  %s1203_s13 = int_to_ptr.vmem [resolvable:$true] %s1202_s13 }
 0x349   : > { %s1204_s1 = sshll.u32 %s1201_s17, 4  ;;  %s1183_s19 = scalar_lea.sflag [#allocation5], %s2165_s8  ;;  %s1205_s1 = int_to_ptr.hbm [resolvable:$true] %s1204_s1 }
 0x34a   : > { %s1941_s20 = sshra.s32 %s1205_s1, 4  ;;  %s1947_s29 = scalar_lea.hbm %s2325_s5, 256  ;;  %s1942_s20 = int_to_ptr.hbm [resolvable:$true] %s1941_s20 }
 0x34b   : > { %v1105_v13 = vpop.f32.mrf.mxu2  ;;  %s1943_s10 = scalar_lea.hbm %s1942_s20, 128  ;;  %p1948_p9 = scmp.lt.s32.totalorder %s1942_s20, %s2325_s5 }
 0x34c   : > { %1129 = vst [vmem:[%s2227_s28 + $0x58] sm:$0xff] %v1105_v13  ;;  %p1944_p4 = scmp.ne.s32.totalorder %s1942_s20, %s1943_s10  ;;  %p1949_p1 = scmp.lt.s32.totalorder %s1947_s29, %s1943_s10 }
 0x34e   : > { %p1945_p6 = pnand %p1944_p4, %p2142_p2  ;;  %p1950_p3 = por %p1949_p1, %p1948_p9 }
 0x350   : > { %p1946_p8 = pneg %p1945_p6 }
 0x352   : > { %p1951_p7 = pnand %p1950_p3, %p1946_p8 }
 0x353   : > { %v1108_v14 = vpop.f32.mrf.mxu3 }
 0x354   : > { %1130 = vst [vmem:[%s2227_s28 + $0x60] sm:$0xff] %v1108_v14 }
 0x35b   : > { %v1110_v15 = vpop.f32.mrf.mxu3 }
 0x35c   : > { %1131 = vst [vmem:[%s2227_s28 + $0x68] sm:$0xff] %v1110_v15 }
 0x363   : > { %v1113_v16 = vpop.f32.mrf.mxu3 }
 0x364   : > { %1132 = vst [vmem:[%s2227_s28 + $0x70] sm:$0xff] %v1113_v16 }
 0x36b   : > { %v1115_v17 = vpop.f32.mrf.mxu3 }
 0x36c   : > { %1133 = vst [vmem:[%s2227_s28 + $0x78] sm:$0xff] %v1115_v17 }
 0x36d   : > { %1954 = shalt.err (!%p1951_p7)
}
 0x36e   : > { %1685 = dma.vmem_to_hbm [thread:$0]  (%p2142_p2), %s1203_s13, 2048, %s1205_s1, %s1183_s19, %s2023_s18, %s2023_s18, %s2024_s27  }
 0x36f PF: > { %s1238_s8 = sand.u32 1, %s1997_s21   ;;  %p1701_p11 = pnand %p1383_p10, %p2107_p5 }
 0x370   : > { %s1239_s28 = scalar_lea.sflag [#allocation5], %s1238_s8 }
 0x371   : > { %p1702_p12 = pneg %p1701_p11 }
 0x373   : > { %1988 = dma.done.wait (%p1702_p12), %s1239_s28, 2048  }
 0x374   : > { %1990 = vsyncadd (%p1702_p12), %s1239_s28, 4294965248  ;;  %s1249_s11 = scalar_lea.sflag [#allocation11], %s1238_s8 }
 0x375   : > { %1992 = dma.done.wait (%p1702_p12), %s1249_s11, 2048  }
 0x376   : > { %1994 = vsyncadd (%p1702_p12), %s1249_s11, 4294965248  ;;  %s27_s26 = sadd.s32 1, %s2017_s26   ;;  %s2342_s9 = sld [smem:[#allocation16_spill]] }
 0x377   : > { %p24_p13 = scmp.ge.s32.totalorder %s27_s26, 4   ;;  %s2343_s21 = smov %s2001_s22 }
 0x378   : > { %s2344_s22 = smov %s2005_s23  ;;  %s2345_s23 = smov %s2152_s14 }
 0x379   : > { %s2346_s24 = smov %s2013_s25  ;;  %26 = sbr.rel (!%p24_p13) target bundleno = 12 (0xc), region = 118 }
 0x37c   : > { %s2347_s25 = smov %s2342_s9 }
 0x37e   :  { %1255 = vsyncpa [#allocation4], 1 }
 0x37f   :  { %1257 = vsyncpa [#allocation4 + $0x1], 1 }
 0x380   :  { %1258 = vsyncpa [#allocation7], 1 }
 0x381   :  { %1259 = vsyncpa [#allocation5], 1 }
 0x382   :  { %1261 = vsyncpa [#allocation5 + $0x1], 1 }
 0x383   :  { %1262 = vsyncpa [#allocation11], 1 }
 0x384   :  { %1264 = vsyncpa [#allocation11 + $0x1], 1 }

</bundles_post_ra>
